<compile_context>
chip_gen: v5e
topology: v5e:2x2
jax: 0.10.0
libtpu: 0.0.40
codegen_flags: <defaults>
</compile_context>

<pallas_src>
import jax
import jax.numpy as jnp
import numpy as np
from jax.experimental import pallas as pl
from jax.experimental.pallas import tpu as pltpu

# ----- static configuration (small, consistent with the module) -----
B = 8              # batch
C_IN = 4           # image channels
H = W = 16         # spatial
HW = H * W
ENC_DIM = 32       # synthetic encoder output dim (== `dim` fed to KMCL)
DS_DIM = 128       # newDim, hard-coded to 128 in KMCL for the anisotropic case
K = 8              # out_classes
HEAD_PAD = 128     # pi(K) + var(1) + zero pad -> one 128-lane block
MU_W = K * DS_DIM                 # 1024
HEAD_W = MU_W + HEAD_PAD          # 1152: [ mu(1024) | pi(8) | var(1) | pad(119) ]
MAX_BT = 128       # batch tile (fills MXU rows once B scales)


def kmcl_kernel(x_ref, enc_w_ref, enc_b_ref, ds_w_ref, ds_b_ref,
                heads_w_ref, heads_b_ref, feat_ref, mu_ref, pv_ref):
    # ---- synthetic encoder, GAP fused into the matmul ----
    # (BT, C*HW) @ (C*HW, ENC_DIM); enc_w was pre-tiled along HW and /HW'd.
    h = jnp.dot(x_ref[...], enc_w_ref[...],
                preferred_element_type=jnp.float32) + enc_b_ref[...]
    h = jnp.maximum(h, 0.0)                               # ReLU, (BT, ENC_DIM)

    # ---- downsampler: Conv1d(dim, 128, kernel_size=1) == Linear ----
    feat = jnp.dot(h, ds_w_ref[...],
                   preferred_element_type=jnp.float32) + ds_b_ref[...]
    feat_ref[...] = feat                                  # (BT, 128)

    # ---- merged KMM heads: one lane-dense matmul, bf16 weights, f32 acc ----
    slab = jnp.dot(feat.astype(jnp.bfloat16), heads_w_ref[...],
                   preferred_element_type=jnp.float32) + heads_b_ref[...]
    # split at the 1024-lane (tile-aligned) boundary -> both stores lane-dense
    mu_ref[...] = slab[:, :MU_W]                          # (BT, 1024)
    pv_ref[...] = slab[:, MU_W:]                          # (BT, 128): [pi|var|pad]


def kmcl_forward(x, kp):
    """x: (B, C, H, W) float32.  Returns (feat, {'pi','mu','var'})."""
    b, c, h, w = x.shape
    hw = h * w
    x2d = x.reshape(b, c * hw)

    bt = min(MAX_BT, b)
    b_pad = pl.cdiv(b, bt) * bt
    if b_pad != b:
        x2d = jnp.pad(x2d, ((0, b_pad - b), (0, 0)))

    grid = (b_pad // bt,)
    row_map = lambda i: (i, 0)
    w_map = lambda i: (0, 0)   # weights resident across grid steps

    in_specs = [
        pl.BlockSpec((bt, c * hw), row_map),          # x (flattened, GAP-fused)
        pl.BlockSpec((c * hw, ENC_DIM), w_map),       # enc_w_exp
        pl.BlockSpec((1, ENC_DIM), w_map),            # enc_b
        pl.BlockSpec((ENC_DIM, DS_DIM), w_map),       # ds_w
        pl.BlockSpec((1, DS_DIM), w_map),             # ds_b
        pl.BlockSpec((DS_DIM, HEAD_W), w_map),        # merged head weight (bf16)
        pl.BlockSpec((1, HEAD_W), w_map),             # merged head bias (f32)
    ]
    out_specs = (
        pl.BlockSpec((bt, DS_DIM), row_map),          # feat
        pl.BlockSpec((bt, MU_W), row_map),            # mu
        pl.BlockSpec((bt, HEAD_PAD), row_map),        # [pi | var | pad]
    )
    out_shape = (
        jax.ShapeDtypeStruct((b_pad, DS_DIM), jnp.float32),
        jax.ShapeDtypeStruct((b_pad, MU_W), jnp.float32),
        jax.ShapeDtypeStruct((b_pad, HEAD_PAD), jnp.float32),
    )

    feat, mu, pv = pl.pallas_call(
        kmcl_kernel,
        grid=grid,
        in_specs=in_specs,
        out_specs=out_specs,
        out_shape=out_shape,
        compiler_params=pltpu.CompilerParams(
            dimension_semantics=("parallel",)),
    )(x2d, kp["enc_w_exp"], kp["enc_b"], kp["ds_w"], kp["ds_b"],
      kp["heads_w"], kp["heads_b"])

    feat = feat[:b]
    mu = mu[:b]                                            # (B, K*128)
    pv = pv[:b]

    pi = pv[:, :K]                                         # (B, K)
    va = pv[:, K:K + 1]                                    # (B, 1)
    # var = 1e-7 + 1 + 1 + ELU(va); RBF branch: repeat_interleave(K).reshape(-1, K)
    var = 1e-7 + 1.0 + 1.0 + jnp.where(va > 0, va, jnp.expm1(va))
    var = jnp.broadcast_to(var, (b, K))
    return feat, {"pi": pi, "mu": mu, "var": var}


def init_params(key):
    """Raw (PyTorch-semantics) parameters; weights stored as (in, out)."""
    k_enc, k_ds, k_pi, k_mean = jax.random.split(key, 4)

    enc_bound = 1.0 / jnp.sqrt(C_IN)
    enc_w = jax.random.uniform(k_enc, (C_IN, ENC_DIM), jnp.float32,
                               -enc_bound, enc_bound)
    enc_b = jnp.zeros((1, ENC_DIM), jnp.float32)

    ds_bound = 1.0 / jnp.sqrt(ENC_DIM)
    ds_w = jax.random.uniform(k_ds, (ENC_DIM, DS_DIM), jnp.float32,
                              -ds_bound, ds_bound)
    ds_b = jnp.zeros((1, DS_DIM), jnp.float32)

    pi_bound = 1.0 / jnp.sqrt(DS_DIM)
    pi_w = jax.random.uniform(k_pi, (DS_DIM, K), jnp.float32,
                              -pi_bound, pi_bound)
    pi_b = jnp.zeros((1, K), jnp.float32)

    # KMM.reset_parameters: mean ~ U(0, 0.1), mean bias 0, var weight 1, var bias 0
    mean_w = jax.random.uniform(k_mean, (DS_DIM, K * DS_DIM), jnp.float32,
                                0.0, 0.1)
    mean_b = jnp.zeros((1, K * DS_DIM), jnp.float32)
    var_w = jnp.ones((DS_DIM, 1), jnp.float32)
    var_b = jnp.zeros((1, 1), jnp.float32)

    return {
        "enc_w": enc_w, "enc_b": enc_b,
        "ds_w": ds_w, "ds_b": ds_b,
        "pi_w": pi_w, "pi_b": pi_b,
        "mean_w": mean_w, "mean_b": mean_b,
        "var_w": var_w, "var_b": var_b,
    }


def prepare_params(raw, hw):
    """Kernel-layout params: GAP fused into enc_w, heads merged + bf16."""
    # gap @ enc_w == x2d @ repeat(enc_w, HW, axis=0) / HW   (channel-major flatten)
    enc_w_exp = jnp.repeat(raw["enc_w"] / hw, hw, axis=0)          # (C*HW, ENC_DIM)

    pad_w = jnp.zeros((DS_DIM, HEAD_PAD - K - 1), jnp.float32)
    pad_b = jnp.zeros((1, HEAD_PAD - K - 1), jnp.float32)
    heads_w = jnp.concatenate(
        [raw["mean_w"], raw["pi_w"], raw["var_w"], pad_w], axis=1)  # (128, 1152)
    heads_b = jnp.concatenate(
        [raw["mean_b"], raw["pi_b"], raw["var_b"], pad_b], axis=1)  # (1, 1152)

    return {
        "enc_w_exp": enc_w_exp,
        "enc_b": raw["enc_b"],
        "ds_w": raw["ds_w"],
        "ds_b": raw["ds_b"],
        "heads_w": heads_w.astype(jnp.bfloat16),   # dominant HBM transfer -> bf16
        "heads_b": heads_b,                        # f32, added after f32 accumulation
    }


def kmcl_reference(x, raw):
    """Pure-JAX f32 reference matching the PyTorch module semantics."""
    b, c, h, w = x.shape
    gap = jnp.mean(x.reshape(b, c, h * w), axis=-1)
    hh = jnp.maximum(gap @ raw["enc_w"] + raw["enc_b"], 0.0)
    feat = hh @ raw["ds_w"] + raw["ds_b"]
    pi = feat @ raw["pi_w"] + raw["pi_b"]
    mu = feat @ raw["mean_w"] + raw["mean_b"]
    va = feat @ raw["var_w"] + raw["var_b"]
    var = 1e-7 + 1.0 + 1.0 + jnp.where(va > 0, va, jnp.expm1(va))
    var = jnp.broadcast_to(var, (b, K))
    return feat, {"pi": pi, "mu": mu, "var": var}


if __name__ == "__main__":
    key = jax.random.PRNGKey(0)
    k_x, k_p = jax.random.split(key)
    x = jax.random.normal(k_x, (B, C_IN, H, W), dtype=jnp.float32)
    raw = init_params(k_p)
    kp = prepare_params(raw, HW)

    feat, out = jax.jit(kmcl_forward)(x, kp)
    jax.block_until_ready((feat, out))

    feat_r, out_r = kmcl_reference(x, raw)

    assert feat.shape == (B, DS_DIM)
    assert out["pi"].shape == (B, K)
    assert out["mu"].shape == (B, K * DS_DIM)
    assert out["var"].shape == (B, K)

    # bf16 head weights + fused-GAP reordering -> loose but meaningful tolerances
    np.testing.assert_allclose(np.asarray(feat), np.asarray(feat_r),
                               rtol=1e-2, atol=1e-2)
    np.testing.assert_allclose(np.asarray(out["pi"]), np.asarray(out_r["pi"]),
                               rtol=2e-2, atol=2e-2)
    np.testing.assert_allclose(np.asarray(out["mu"]), np.asarray(out_r["mu"]),
                               rtol=2e-2, atol=2e-2)
    np.testing.assert_allclose(np.asarray(out["var"]), np.asarray(out_r["var"]),
                               rtol=2e-2, atol=2e-2)
    # var = 1e-7 + 2 + ELU(.) with ELU > -1  =>  var > 1
    assert bool(jnp.all(out["var"] > 1.0))

    print("KERNEL_OK")
</pallas_src>

<mosaic_0001>
module attributes {stable_mosaic.version = 11 : i64} {
  func.func @kmcl_kernel(%arg0: i32, %arg1: memref<8x1024xf32, #tpu.memory_space<vmem>>, %arg2: memref<1024x32xf32, #tpu.memory_space<vmem>>, %arg3: memref<1x32xf32, #tpu.memory_space<vmem>>, %arg4: memref<32x128xf32, #tpu.memory_space<vmem>>, %arg5: memref<1x128xf32, #tpu.memory_space<vmem>>, %arg6: memref<128x1152xbf16, #tpu.memory_space<vmem>>, %arg7: memref<1x1152xf32, #tpu.memory_space<vmem>>, %arg8: memref<8x128xf32, #tpu.memory_space<vmem>>, %arg9: memref<8x1024xf32, #tpu.memory_space<vmem>>, %arg10: memref<8x128xf32, #tpu.memory_space<vmem>>) attributes {dimension_semantics = [#tpu.dimension_semantics<parallel>], iteration_bounds = array<i64: 1>, scalar_prefetch = 0 : i64, scratch_operands = 0 : i64, tpu.core_type = #tpu.core_type<tc>, window_params = [{transform_indices = @transform_0, window_bounds = array<i64: 8, 1024>}, {pipeline_mode = #tpu.pipeline_mode<synchronous>, transform_indices = @transform_1, window_bounds = array<i64: 1024, 32>}, {pipeline_mode = #tpu.pipeline_mode<synchronous>, transform_indices = @transform_2, window_bounds = array<i64: 1, 32>}, {pipeline_mode = #tpu.pipeline_mode<synchronous>, transform_indices = @transform_3, window_bounds = array<i64: 32, 128>}, {pipeline_mode = #tpu.pipeline_mode<synchronous>, transform_indices = @transform_4, window_bounds = array<i64: 1, 128>}, {pipeline_mode = #tpu.pipeline_mode<synchronous>, transform_indices = @transform_5, window_bounds = array<i64: 128, 1152>}, {pipeline_mode = #tpu.pipeline_mode<synchronous>, transform_indices = @transform_6, window_bounds = array<i64: 1, 1152>}, {transform_indices = @transform_7, window_bounds = array<i64: 8, 128>}, {transform_indices = @transform_8, window_bounds = array<i64: 8, 1024>}, {transform_indices = @transform_9, window_bounds = array<i64: 8, 128>}]} {
    %c0 = arith.constant 0 : index
    %c0_0 = arith.constant 0 : index
    %0 = vector.load %arg1[%c0, %c0_0] : memref<8x1024xf32, #tpu.memory_space<vmem>>, vector<8x1024xf32>
    %c0_1 = arith.constant 0 : index
    %c0_2 = arith.constant 0 : index
    %1 = vector.load %arg2[%c0_1, %c0_2] : memref<1024x32xf32, #tpu.memory_space<vmem>>, vector<1024x32xf32>
    %cst = arith.constant dense<0.000000e+00> : vector<8x32xf32>
    %2 = tpu.matmul %0, %1, %cst {dimension_numbers = #tpu.dot_dimension_numbers<[1], [0], [0], [1], [0, 0, 1, 1], [], []>} : vector<8x1024xf32>, vector<1024x32xf32>, vector<8x32xf32> -> vector<8x32xf32>
    %c0_3 = arith.constant 0 : index
    %c0_4 = arith.constant 0 : index
    %3 = vector.load %arg3[%c0_3, %c0_4] : memref<1x32xf32, #tpu.memory_space<vmem>>, vector<1x32xf32>
    %4 = vector.broadcast %3 : vector<1x32xf32> to vector<8x32xf32>
    %5 = arith.addf %2, %4 : vector<8x32xf32>
    %cst_5 = arith.constant 0.000000e+00 : f32
    %6 = vector.broadcast %cst_5 : f32 to vector<8x32xf32>
    %7 = arith.maximumf %5, %6 : vector<8x32xf32>
    %c0_6 = arith.constant 0 : index
    %c0_7 = arith.constant 0 : index
    %8 = vector.load %arg4[%c0_6, %c0_7] : memref<32x128xf32, #tpu.memory_space<vmem>>, vector<32x128xf32>
    %cst_8 = arith.constant dense<0.000000e+00> : vector<8x128xf32>
    %9 = tpu.matmul %7, %8, %cst_8 {dimension_numbers = #tpu.dot_dimension_numbers<[1], [0], [0], [1], [0, 0, 1, 1], [], []>} : vector<8x32xf32>, vector<32x128xf32>, vector<8x128xf32> -> vector<8x128xf32>
    %c0_9 = arith.constant 0 : index
    %c0_10 = arith.constant 0 : index
    %10 = vector.load %arg5[%c0_9, %c0_10] : memref<1x128xf32, #tpu.memory_space<vmem>>, vector<1x128xf32>
    %11 = vector.broadcast %10 : vector<1x128xf32> to vector<8x128xf32>
    %12 = arith.addf %9, %11 : vector<8x128xf32>
    %c0_11 = arith.constant 0 : index
    %c0_12 = arith.constant 0 : index
    %13 = vector.load %arg8[%c0_11, %c0_12] : memref<8x128xf32, #tpu.memory_space<vmem>>, vector<8x128xf32>
    tpu.vector_store %arg8[%c0_11, %c0_12], %12 {strides = array<i32>} : memref<8x128xf32, #tpu.memory_space<vmem>>, vector<8x128xf32>,
    %14 = arith.truncf %12 : vector<8x128xf32> to vector<8x128xbf16>
    %c0_13 = arith.constant 0 : index
    %c0_14 = arith.constant 0 : index
    %15 = vector.load %arg6[%c0_13, %c0_14] : memref<128x1152xbf16, #tpu.memory_space<vmem>>, vector<128x1152xbf16>
    %cst_15 = arith.constant dense<0.000000e+00> : vector<8x1152xf32>
    %16 = tpu.matmul %14, %15, %cst_15 {dimension_numbers = #tpu.dot_dimension_numbers<[1], [0], [0], [1], [0, 0, 1, 1], [], []>} : vector<8x128xbf16>, vector<128x1152xbf16>, vector<8x1152xf32> -> vector<8x1152xf32>
    %c0_16 = arith.constant 0 : index
    %c0_17 = arith.constant 0 : index
    %17 = vector.load %arg7[%c0_16, %c0_17] : memref<1x1152xf32, #tpu.memory_space<vmem>>, vector<1x1152xf32>
    %18 = vector.broadcast %17 : vector<1x1152xf32> to vector<8x1152xf32>
    %19 = arith.addf %16, %18 : vector<8x1152xf32>
    %20 = vector.extract_strided_slice %19 {offsets = [0, 0], sizes = [8, 1024], strides = [1, 1]} : vector<8x1152xf32> to vector<8x1024xf32>
    %c0_18 = arith.constant 0 : index
    %c0_19 = arith.constant 0 : index
    %21 = vector.load %arg9[%c0_18, %c0_19] : memref<8x1024xf32, #tpu.memory_space<vmem>>, vector<8x1024xf32>
    tpu.vector_store %arg9[%c0_18, %c0_19], %20 {strides = array<i32>} : memref<8x1024xf32, #tpu.memory_space<vmem>>, vector<8x1024xf32>,
    %22 = vector.extract_strided_slice %19 {offsets = [0, 1024], sizes = [8, 128], strides = [1, 1]} : vector<8x1152xf32> to vector<8x128xf32>
    %c0_20 = arith.constant 0 : index
    %c0_21 = arith.constant 0 : index
    %23 = vector.load %arg10[%c0_20, %c0_21] : memref<8x128xf32, #tpu.memory_space<vmem>>, vector<8x128xf32>
    tpu.vector_store %arg10[%c0_20, %c0_21], %22 {strides = array<i32>} : memref<8x128xf32, #tpu.memory_space<vmem>>, vector<8x128xf32>,
    return
  }
  func.func @transform_0(%arg0: i32) -> (i32, i32) {
    %c0_i32 = arith.constant 0 : i32
    %c0_i32_0 = arith.constant 0 : i32
    return %arg0, %c0_i32 : i32, i32
  }
  func.func @transform_1(%arg0: i32) -> (i32, i32) {
    %c0_i32 = arith.constant 0 : i32
    %c0_i32_0 = arith.constant 0 : i32
    %c0_i32_1 = arith.constant 0 : i32
    return %c0_i32, %c0_i32_0 : i32, i32
  }
  func.func @transform_2(%arg0: i32) -> (i32, i32) {
    %c0_i32 = arith.constant 0 : i32
    %c0_i32_0 = arith.constant 0 : i32
    %c0_i32_1 = arith.constant 0 : i32
    return %c0_i32, %c0_i32_0 : i32, i32
  }
  func.func @transform_3(%arg0: i32) -> (i32, i32) {
    %c0_i32 = arith.constant 0 : i32
    %c0_i32_0 = arith.constant 0 : i32
    %c0_i32_1 = arith.constant 0 : i32
    return %c0_i32, %c0_i32_0 : i32, i32
  }
  func.func @transform_4(%arg0: i32) -> (i32, i32) {
    %c0_i32 = arith.constant 0 : i32
    %c0_i32_0 = arith.constant 0 : i32
    %c0_i32_1 = arith.constant 0 : i32
    return %c0_i32, %c0_i32_0 : i32, i32
  }
  func.func @transform_5(%arg0: i32) -> (i32, i32) {
    %c0_i32 = arith.constant 0 : i32
    %c0_i32_0 = arith.constant 0 : i32
    %c0_i32_1 = arith.constant 0 : i32
    return %c0_i32, %c0_i32_0 : i32, i32
  }
  func.func @transform_6(%arg0: i32) -> (i32, i32) {
    %c0_i32 = arith.constant 0 : i32
    %c0_i32_0 = arith.constant 0 : i32
    %c0_i32_1 = arith.constant 0 : i32
    return %c0_i32, %c0_i32_0 : i32, i32
  }
  func.func @transform_7(%arg0: i32) -> (i32, i32) {
    %c0_i32 = arith.constant 0 : i32
    %c0_i32_0 = arith.constant 0 : i32
    return %arg0, %c0_i32 : i32, i32
  }
  func.func @transform_8(%arg0: i32) -> (i32, i32) {
    %c0_i32 = arith.constant 0 : i32
    %c0_i32_0 = arith.constant 0 : i32
    return %arg0, %c0_i32 : i32, i32
  }
  func.func @transform_9(%arg0: i32) -> (i32, i32) {
    %c0_i32 = arith.constant 0 : i32
    %c0_i32_0 = arith.constant 0 : i32
    return %arg0, %c0_i32 : i32, i32
  }
}

</mosaic_0001>

<bundles_post_ra>
// kernel: kmcl_forward.1
= control target key start
LH: loop header
LB: loop body
LE: loop exit
PB: predicated region body
PF: predicated region fallthrough
CT: control target
= control target key end

     0   :  { %15 = vsyncpa [#allocation3], 0  ;;  %s2342_s0 = inlined_call_operand.vmem [shape: f32[8,1024], index: 0, kind: input, shape index: {}]   ;;  %s2343_s1 = inlined_call_operand.vmem [shape: f32[1024,32], index: 1, kind: input, shape index: {}]   ;;  %s2344_s2 = inlined_call_operand.vmem [shape: f32[1,32], index: 2, kind: input, shape index: {}]   ;;  %s2345_s3 = inlined_call_operand.vmem [shape: f32[32,128], index: 3, kind: input, shape index: {}]   ;;  %s2346_s4 = inlined_call_operand.vmem [shape: f32[1,128], index: 4, kind: input, shape index: {}]   ;;  %s2347_s5 = inlined_call_operand.vmem [shape: bf16[128,1152], index: 5, kind: input, shape index: {}]   ;;  %s2348_s6 = inlined_call_operand.vmem [shape: f32[1,1152], index: 6, kind: input, shape index: {}]   ;;  %s2349_s7 = inlined_call_operand.hbm [shape: f32[8,128], index: 7, kind: output, shape index: {0}]   ;;  %s2350_s8 = inlined_call_operand.hbm [shape: f32[8,1024], index: 8, kind: output, shape index: {1}]   ;;  %s2351_s9 = inlined_call_operand.vmem [shape: f32[8,128], index: 9, kind: output, shape index: {2}]  }
   0x1   :  { %v86_v0 = vld [vmem:[%s2343_s1 + $0x178] sm:$0xff]  ;;  %v85_v2 = vld [vmem:[%s2343_s1 + $0x170] sm:$0xff]  ;;  %v84_v6 = vld [vmem:[%s2343_s1 + $0x168] sm:$0xff] }
   0x2   :  { %v54_v1 = vld [vmem:[%s2343_s1 + $0x78] sm:$0xff]  ;;  %211 = vmatpush.msra.mxu2 %v86_v0  ;;  %v53_v4 = vld [vmem:[%s2343_s1 + $0x70] sm:$0xff]  ;;  %v52_v8 = vld [vmem:[%s2343_s1 + $0x68] sm:$0xff] }
   0x3   :  { %171 = vmatpush.msra.mxu0 %v54_v1  ;;  %v102_v3 = vld [vmem:[%s2343_s1 + $0x1f8] sm:$0xff]  ;;  %v101_v7 = vld [vmem:[%s2343_s1 + $0x1f0] sm:$0xff]  ;;  %v100_v10 = vld [vmem:[%s2343_s1 + $0x1e8] sm:$0xff] }
   0x4   :  { %v70_v5 = vld [vmem:[%s2343_s1 + $0xf8] sm:$0xff]  ;;  %231 = vmatpush.msra.mxu3 %v102_v3  ;;  %212 = vmatpush.msra.mxu2 %v85_v2  ;;  %v69_v9 = vld [vmem:[%s2343_s1 + $0xf0] sm:$0xff]  ;;  %v83_v11 = vld [vmem:[%s2343_s1 + $0x160] sm:$0xff] }
   0x5   :  { %191 = vmatpush.msra.mxu1 %v70_v5  ;;  %172 = vmatpush.msra.mxu0 %v53_v4  ;;  %v51_v12 = vld [vmem:[%s2343_s1 + $0x60] sm:$0xff]  ;;  %v68_v13 = vld [vmem:[%s2343_s1 + $0xe8] sm:$0xff]  ;;  %v82_v16 = vld [vmem:[%s2343_s1 + $0x158] sm:$0xff] }
   0x6   :  { %232 = vmatpush.msra.mxu3 %v101_v7  ;;  %213 = vmatpush.msra.mxu2 %v84_v6  ;;  %v99_v14 = vld [vmem:[%s2343_s1 + $0x1e0] sm:$0xff]  ;;  %v50_v17 = vld [vmem:[%s2343_s1 + $0x58] sm:$0xff]  ;;  %v81_v20 = vld [vmem:[%s2343_s1 + $0x150] sm:$0xff] }
   0x7   :  { %192 = vmatpush.msra.mxu1 %v69_v9  ;;  %173 = vmatpush.msra.mxu0 %v52_v8  ;;  %v67_v15 = vld [vmem:[%s2343_s1 + $0xe0] sm:$0xff]  ;;  %v98_v18 = vld [vmem:[%s2343_s1 + $0x1d8] sm:$0xff]  ;;  %v49_v21 = vld [vmem:[%s2343_s1 + $0x50] sm:$0xff] }
   0x8   :  { %233 = vmatpush.msra.mxu3 %v100_v10  ;;  %214 = vmatpush.msra.mxu2 %v83_v11  ;;  %v66_v19 = vld [vmem:[%s2343_s1 + $0xd8] sm:$0xff]  ;;  %v97_v22 = vld [vmem:[%s2343_s1 + $0x1d0] sm:$0xff]  ;;  %v80_v24 = vld [vmem:[%s2343_s1 + $0x148] sm:$0xff] }
   0x9   :  { %193 = vmatpush.msra.mxu1 %v68_v13  ;;  %174 = vmatpush.msra.mxu0 %v51_v12  ;;  %v65_v23 = vld [vmem:[%s2343_s1 + $0xd0] sm:$0xff]  ;;  %v48_v25 = vld [vmem:[%s2343_s1 + $0x48] sm:$0xff]  ;;  %v79_v28 = vld [vmem:[%s2343_s1 + $0x140] sm:$0xff] }
   0xa   :  { %234 = vmatpush.msra.mxu3 %v99_v14  ;;  %215 = vmatpush.msra.mxu2 %v82_v16  ;;  %v96_v26 = vld [vmem:[%s2343_s1 + $0x1c8] sm:$0xff]  ;;  %v47_v29 = vld [vmem:[%s2343_s1 + $0x40] sm:$0xff]  ;;  %v78_v32 = vld [vmem:[%s2343_s1 + $0x138] sm:$0xff] }
   0xb   :  { %194 = vmatpush.msra.mxu1 %v67_v15  ;;  %175 = vmatpush.msra.mxu0 %v50_v17  ;;  %v64_v27 = vld [vmem:[%s2343_s1 + $0xc8] sm:$0xff]  ;;  %v95_v30 = vld [vmem:[%s2343_s1 + $0x1c0] sm:$0xff]  ;;  %v46_v33 = vld [vmem:[%s2343_s1 + $0x38] sm:$0xff] }
   0xc   :  { %235 = vmatpush.msra.mxu3 %v98_v18  ;;  %216 = vmatpush.msra.mxu2 %v81_v20  ;;  %v63_v31 = vld [vmem:[%s2343_s1 + $0xc0] sm:$0xff]  ;;  %v94_v34 = vld [vmem:[%s2343_s1 + $0x1b8] sm:$0xff]  ;;  %v77_v36 = vld [vmem:[%s2343_s1 + $0x130] sm:$0xff] }
   0xd   :  { %195 = vmatpush.msra.mxu1 %v66_v19  ;;  %176 = vmatpush.msra.mxu0 %v49_v21  ;;  %v62_v35 = vld [vmem:[%s2343_s1 + $0xb8] sm:$0xff]  ;;  %v45_v37 = vld [vmem:[%s2343_s1 + $0x30] sm:$0xff]  ;;  %v76_v40 = vld [vmem:[%s2343_s1 + $0x128] sm:$0xff] }
   0xe   :  { %236 = vmatpush.msra.mxu3 %v97_v22  ;;  %217 = vmatpush.msra.mxu2 %v80_v24  ;;  %v93_v38 = vld [vmem:[%s2343_s1 + $0x1b0] sm:$0xff]  ;;  %v44_v41 = vld [vmem:[%s2343_s1 + $0x28] sm:$0xff]  ;;  %v75_v44 = vld [vmem:[%s2343_s1 + $0x120] sm:$0xff] }
   0xf   :  { %196 = vmatpush.msra.mxu1 %v65_v23  ;;  %177 = vmatpush.msra.mxu0 %v48_v25  ;;  %v61_v39 = vld [vmem:[%s2343_s1 + $0xb0] sm:$0xff]  ;;  %v92_v42 = vld [vmem:[%s2343_s1 + $0x1a8] sm:$0xff]  ;;  %v43_v45 = vld [vmem:[%s2343_s1 + $0x20] sm:$0xff] }
  0x10   :  { %237 = vmatpush.msra.mxu3 %v96_v26  ;;  %218 = vmatpush.msra.mxu2 %v79_v28  ;;  %v60_v43 = vld [vmem:[%s2343_s1 + $0xa8] sm:$0xff]  ;;  %v91_v46 = vld [vmem:[%s2343_s1 + $0x1a0] sm:$0xff]  ;;  %v74_v48 = vld [vmem:[%s2343_s1 + $0x118] sm:$0xff] }
  0x11   :  { %197 = vmatpush.msra.mxu1 %v64_v27  ;;  %178 = vmatpush.msra.mxu0 %v47_v29  ;;  %v59_v47 = vld [vmem:[%s2343_s1 + $0xa0] sm:$0xff]  ;;  %v42_v49 = vld [vmem:[%s2343_s1 + $0x18] sm:$0xff]  ;;  %v73_v52 = vld [vmem:[%s2343_s1 + $0x110] sm:$0xff] }
  0x12   :  { %238 = vmatpush.msra.mxu3 %v95_v30  ;;  %219 = vmatpush.msra.mxu2 %v78_v32  ;;  %v90_v50 = vld [vmem:[%s2343_s1 + $0x198] sm:$0xff]  ;;  %v41_v53 = vld [vmem:[%s2343_s1 + $0x10] sm:$0xff]  ;;  %v72_v56 = vld [vmem:[%s2343_s1 + $0x108] sm:$0xff] }
  0x13   :  { %198 = vmatpush.msra.mxu1 %v63_v31  ;;  %179 = vmatpush.msra.mxu0 %v46_v33  ;;  %v58_v51 = vld [vmem:[%s2343_s1 + $0x98] sm:$0xff]  ;;  %v89_v54 = vld [vmem:[%s2343_s1 + $0x190] sm:$0xff]  ;;  %v40_v57 = vld [vmem:[%s2343_s1 + $0x8] sm:$0xff] }
  0x14   :  { %239 = vmatpush.msra.mxu3 %v94_v34  ;;  %220 = vmatpush.msra.mxu2 %v77_v36  ;;  %v57_v55 = vld [vmem:[%s2343_s1 + $0x90] sm:$0xff]  ;;  %v88_v58 = vld [vmem:[%s2343_s1 + $0x188] sm:$0xff]  ;;  %v71_v60 = vld [vmem:[%s2343_s1 + $0x100] sm:$0xff] }
  0x15   :  { %199 = vmatpush.msra.mxu1 %v62_v35  ;;  %180 = vmatpush.msra.mxu0 %v45_v37  ;;  %v56_v59 = vld [vmem:[%s2343_s1 + $0x88] sm:$0xff]  ;;  %v39_v61 = vld [vmem:[%s2343_s1] sm:$0xff]  ;;  %v150_v62 = vld [vmem:[%s2343_s1 + $0x378] sm:$0xff] }
  0x16   :  { %240 = vmatpush.msra.mxu3 %v93_v38  ;;  %221 = vmatpush.msra.mxu2 %v76_v40  ;;  %v87_v63 = vld [vmem:[%s2343_s1 + $0x180] sm:$0xff]  ;;  %v118_v0 = vld [vmem:[%s2343_s1 + $0x278] sm:$0xff]  ;;  %v149_v2 = vld [vmem:[%s2343_s1 + $0x370] sm:$0xff] }
  0x17   :  { %200 = vmatpush.msra.mxu1 %v61_v39  ;;  %181 = vmatpush.msra.mxu0 %v44_v41  ;;  %v166_v1 = vld [vmem:[%s2343_s1 + $0x3f8] sm:$0xff]  ;;  %v55_v3 = vld [vmem:[%s2343_s1 + $0x80] sm:$0xff]  ;;  %v117_v4 = vld [vmem:[%s2343_s1 + $0x270] sm:$0xff] }
  0x18   :  { %241 = vmatpush.msra.mxu3 %v92_v42  ;;  %222 = vmatpush.msra.mxu2 %v75_v44  ;;  %v134_v5 = vld [vmem:[%s2343_s1 + $0x2f8] sm:$0xff]  ;;  %v148_v6 = vld [vmem:[%s2343_s1 + $0x368] sm:$0xff]  ;;  %v165_v7 = vld [vmem:[%s2343_s1 + $0x3f0] sm:$0xff] }
  0x19   :  { %201 = vmatpush.msra.mxu1 %v60_v43  ;;  %182 = vmatpush.msra.mxu0 %v43_v45  ;;  %v116_v8 = vld [vmem:[%s2343_s1 + $0x268] sm:$0xff]  ;;  %v133_v9 = vld [vmem:[%s2343_s1 + $0x2f0] sm:$0xff]  ;;  %v147_v10 = vld [vmem:[%s2343_s1 + $0x360] sm:$0xff] }
  0x1a   :  { %242 = vmatpush.msra.mxu3 %v91_v46  ;;  %223 = vmatpush.msra.mxu2 %v74_v48  ;;  %v164_v11 = vld [vmem:[%s2343_s1 + $0x3e8] sm:$0xff]  ;;  %v115_v12 = vld [vmem:[%s2343_s1 + $0x260] sm:$0xff]  ;;  %v146_v14 = vld [vmem:[%s2343_s1 + $0x358] sm:$0xff] }
  0x1b   :  { %202 = vmatpush.msra.mxu1 %v59_v47  ;;  %183 = vmatpush.msra.mxu0 %v42_v49  ;;  %v132_v13 = vld [vmem:[%s2343_s1 + $0x2e8] sm:$0xff]  ;;  %v163_v15 = vld [vmem:[%s2343_s1 + $0x3e0] sm:$0xff]  ;;  %v114_v16 = vld [vmem:[%s2343_s1 + $0x258] sm:$0xff] }
  0x1c   :  { %243 = vmatpush.msra.mxu3 %v90_v50  ;;  %224 = vmatpush.msra.mxu2 %v73_v52  ;;  %v131_v17 = vld [vmem:[%s2343_s1 + $0x2e0] sm:$0xff]  ;;  %v145_v18 = vld [vmem:[%s2343_s1 + $0x350] sm:$0xff]  ;;  %v162_v19 = vld [vmem:[%s2343_s1 + $0x3d8] sm:$0xff] }
  0x1d   :  { %203 = vmatpush.msra.mxu1 %v58_v51  ;;  %184 = vmatpush.msra.mxu0 %v41_v53  ;;  %v113_v20 = vld [vmem:[%s2343_s1 + $0x250] sm:$0xff]  ;;  %v130_v21 = vld [vmem:[%s2343_s1 + $0x2d8] sm:$0xff]  ;;  %v144_v22 = vld [vmem:[%s2343_s1 + $0x348] sm:$0xff] }
  0x1e   :  { %244 = vmatpush.msra.mxu3 %v89_v54  ;;  %225 = vmatpush.msra.mxu2 %v72_v56  ;;  %v161_v23 = vld [vmem:[%s2343_s1 + $0x3d0] sm:$0xff]  ;;  %v112_v24 = vld [vmem:[%s2343_s1 + $0x248] sm:$0xff]  ;;  %v143_v26 = vld [vmem:[%s2343_s1 + $0x340] sm:$0xff] }
  0x1f   :  { %204 = vmatpush.msra.mxu1 %v57_v55  ;;  %185 = vmatpush.msra.mxu0 %v40_v57  ;;  %v129_v25 = vld [vmem:[%s2343_s1 + $0x2d0] sm:$0xff]  ;;  %v160_v27 = vld [vmem:[%s2343_s1 + $0x3c8] sm:$0xff]  ;;  %v111_v28 = vld [vmem:[%s2343_s1 + $0x240] sm:$0xff] }
  0x20   :  { %245 = vmatpush.msra.mxu3 %v88_v58  ;;  %226 = vmatpush.msra.mxu2 %v71_v60  ;;  %v128_v29 = vld [vmem:[%s2343_s1 + $0x2c8] sm:$0xff]  ;;  %v142_v30 = vld [vmem:[%s2343_s1 + $0x338] sm:$0xff]  ;;  %v159_v31 = vld [vmem:[%s2343_s1 + $0x3c0] sm:$0xff] }
  0x21   :  { %205 = vmatpush.msra.mxu1 %v56_v59  ;;  %186 = vmatpush.msra.mxu0 %v39_v61  ;;  %v110_v32 = vld [vmem:[%s2343_s1 + $0x238] sm:$0xff]  ;;  %v127_v33 = vld [vmem:[%s2343_s1 + $0x2c0] sm:$0xff] }
  0x22   :  { %291 = vmatpush.msrb.mxu2 %v150_v62  ;;  %246 = vmatpush.msra.mxu3 %v87_v63 }
  0x23   :  { %251 = vmatpush.msrb.mxu0 %v118_v0  ;;  %206 = vmatpush.msra.mxu1 %v55_v3 }
  0x24   :  { %311 = vmatpush.msrb.mxu3 %v166_v1  ;;  %292 = vmatpush.msrb.mxu2 %v149_v2 }
  0x25   :  { %252 = vmatpush.msrb.mxu0 %v117_v4  ;;  %271 = vmatpush.msrb.mxu1 %v134_v5 }
  0x26   :  { %293 = vmatpush.msrb.mxu2 %v148_v6  ;;  %312 = vmatpush.msrb.mxu3 %v165_v7 }
  0x27   :  { %253 = vmatpush.msrb.mxu0 %v116_v8  ;;  %272 = vmatpush.msrb.mxu1 %v133_v9 }
  0x28   :  { %294 = vmatpush.msrb.mxu2 %v147_v10  ;;  %313 = vmatpush.msrb.mxu3 %v164_v11 }
  0x29   :  { %254 = vmatpush.msrb.mxu0 %v115_v12  ;;  %273 = vmatpush.msrb.mxu1 %v132_v13 }
  0x2a   :  { %295 = vmatpush.msrb.mxu2 %v146_v14  ;;  %314 = vmatpush.msrb.mxu3 %v163_v15 }
  0x2b   :  { %255 = vmatpush.msrb.mxu0 %v114_v16  ;;  %274 = vmatpush.msrb.mxu1 %v131_v17 }
  0x2c   :  { %296 = vmatpush.msrb.mxu2 %v145_v18  ;;  %315 = vmatpush.msrb.mxu3 %v162_v19 }
  0x2d   :  { %256 = vmatpush.msrb.mxu0 %v113_v20  ;;  %275 = vmatpush.msrb.mxu1 %v130_v21 }
  0x2e   :  { %297 = vmatpush.msrb.mxu2 %v144_v22  ;;  %316 = vmatpush.msrb.mxu3 %v161_v23 }
  0x2f   :  { %257 = vmatpush.msrb.mxu0 %v112_v24  ;;  %276 = vmatpush.msrb.mxu1 %v129_v25 }
  0x30   :  { %298 = vmatpush.msrb.mxu2 %v143_v26  ;;  %317 = vmatpush.msrb.mxu3 %v160_v27 }
  0x31   :  { %16 = vsyncpa [#allocation5], 0  ;;  %258 = vmatpush.msrb.mxu0 %v111_v28  ;;  %277 = vmatpush.msrb.mxu1 %v128_v29  ;;  %v141_v34 = vld [vmem:[%s2343_s1 + $0x330] sm:$0xff]  ;;  %v158_v35 = vld [vmem:[%s2343_s1 + $0x3b8] sm:$0xff]  ;;  %vm340_vm0 = vcmask 261120   ;;  %s1416_s29 = smov [#allocation2]  }
  0x32   :  { %299 = vmatpush.msrb.mxu2 %v142_v30  ;;  %318 = vmatpush.msrb.mxu3 %v159_v31  ;;  %v109_v36 = vld [vmem:[%s2343_s1 + $0x230] sm:$0xff]  ;;  %v126_v37 = vld [vmem:[%s2343_s1 + $0x2b8] sm:$0xff]  ;;  %v140_v38 = vld [vmem:[%s2343_s1 + $0x328] sm:$0xff]  ;;  %s967_s30 = sshll.u32 %s1416_s29, 4  ;;  %s969_s11 = sshll.u32 %s2349_s7, 4  ;;  %s968_s30 = int_to_ptr.vmem [resolvable:$true] %s967_s30  ;;  %s970_s11 = int_to_ptr.hbm [resolvable:$true] %s969_s11 }
  0x33   :  { %259 = vmatpush.msrb.mxu0 %v110_v32  ;;  %278 = vmatpush.msrb.mxu1 %v127_v33  ;;  %v157_v39 = vld [vmem:[%s2343_s1 + $0x3b0] sm:$0xff]  ;;  %v108_v40 = vld [vmem:[%s2343_s1 + $0x228] sm:$0xff]  ;;  %v139_v42 = vld [vmem:[%s2343_s1 + $0x320] sm:$0xff]  ;;  %s980_s14 = sshll.u32 %s2350_s8, 4  ;;  %s981_s14 = int_to_ptr.hbm [resolvable:$true] %s980_s14 }
  0x34   :  { %300 = vmatpush.msrb.mxu2 %v141_v34  ;;  %319 = vmatpush.msrb.mxu3 %v158_v35  ;;  %v125_v41 = vld [vmem:[%s2343_s1 + $0x2b0] sm:$0xff]  ;;  %v156_v43 = vld [vmem:[%s2343_s1 + $0x3a8] sm:$0xff]  ;;  %v107_v45 = vld [vmem:[%s2343_s1 + $0x220] sm:$0xff] }
  0x35   :  { %260 = vmatpush.msrb.mxu0 %v109_v36  ;;  %279 = vmatpush.msrb.mxu1 %v126_v37  ;;  %v33_v44 = vld [vmem:[%s2342_s0 + $0x10] sm:$0xff]  ;;  %v124_v46 = vld [vmem:[%s2343_s1 + $0x2a8] sm:$0xff]  ;;  %v138_v47 = vld [vmem:[%s2343_s1 + $0x318] sm:$0xff] }
  0x36   :  { %301 = vmatpush.msrb.mxu2 %v140_v38  ;;  %320 = vmatpush.msrb.mxu3 %v157_v39  ;;  %v155_v48 = vld [vmem:[%s2343_s1 + $0x3a0] sm:$0xff]  ;;  %v34_v50 = vld [vmem:[%s2342_s0 + $0x18] sm:$0xff]  ;;  %v137_v53 = vld [vmem:[%s2343_s1 + $0x310] sm:$0xff] }
  0x37   :  { %261 = vmatpush.msrb.mxu0 %v108_v40  ;;  %280 = vmatpush.msrb.mxu1 %v125_v41  ;;  %v31_v49 = vld [vmem:[%s2342_s0] sm:$0xff]  ;;  %v106_v51 = vld [vmem:[%s2343_s1 + $0x218] sm:$0xff]  ;;  %v32_v55 = vld [vmem:[%s2342_s0 + $0x8] sm:$0xff] }
  0x38   :  { %302 = vmatpush.msrb.mxu2 %v139_v42  ;;  %321 = vmatpush.msrb.mxu3 %v156_v43  ;;  %v123_v52 = vld [vmem:[%s2343_s1 + $0x2a0] sm:$0xff]  ;;  %v154_v54 = vld [vmem:[%s2343_s1 + $0x398] sm:$0xff]  ;;  %v105_v56 = vld [vmem:[%s2343_s1 + $0x210] sm:$0xff] }
  0x39   :  { %227 = vmatmul.f32.vlgmr.msra.gmra.mxu2 %v33_v44  ;;  %262 = vmatpush.msrb.mxu0 %v107_v45  ;;  %v122_v57 = vld [vmem:[%s2343_s1 + $0x298] sm:$0xff]  ;;  %v136_v58 = vld [vmem:[%s2343_s1 + $0x308] sm:$0xff]  ;;  %v153_v59 = vld [vmem:[%s2343_s1 + $0x390] sm:$0xff] }
  0x3a   :  { %281 = vmatpush.msrb.mxu1 %v124_v46  ;;  %303 = vmatpush.msrb.mxu2 %v138_v47  ;;  %v104_v60 = vld [vmem:[%s2343_s1 + $0x208] sm:$0xff]  ;;  %v121_v61 = vld [vmem:[%s2343_s1 + $0x290] sm:$0xff]  ;;  %v135_v62 = vld [vmem:[%s2343_s1 + $0x300] sm:$0xff] }
  0x3b   :  { %322 = vmatpush.msrb.mxu3 %v155_v48  ;;  %187 = vmatmul.f32.vlgmr.msra.gmra.mxu0 %v31_v49  ;;  %v152_v63 = vld [vmem:[%s2343_s1 + $0x388] sm:$0xff]  ;;  %v37_v0 = vld [vmem:[%s2342_s0 + $0x30] sm:$0xff]  ;;  %v103_v1 = vld [vmem:[%s2343_s1 + $0x200] sm:$0xff] }
  0x3c   :  { %247 = vmatmul.f32.vlgmr.msra.gmra.mxu3 %v34_v50  ;;  %263 = vmatpush.msrb.mxu0 %v106_v51  ;;  %v120_v2 = vld [vmem:[%s2343_s1 + $0x288] sm:$0xff]  ;;  %v151_v3 = vld [vmem:[%s2343_s1 + $0x380] sm:$0xff]  ;;  %v38_v5 = vld [vmem:[%s2342_s0 + $0x38] sm:$0xff] }
  0x3d   :  { %282 = vmatpush.msrb.mxu1 %v123_v52  ;;  %304 = vmatpush.msrb.mxu2 %v137_v53  ;;  %v35_v4 = vld [vmem:[%s2342_s0 + $0x20] sm:$0xff]  ;;  %v36_v7 = vld [vmem:[%s2342_s0 + $0x28] sm:$0xff]  ;;  %v335_v8 = vld [vmem:[%s2345_s3 + $0x18] sm:$0xff] }
  0x3e   :  { %323 = vmatpush.msrb.mxu3 %v154_v54  ;;  %207 = vmatmul.f32.vlgmr.msra.gmra.mxu1 %v32_v55  ;;  %v119_v6 = vld [vmem:[%s2343_s1 + $0x280] sm:$0xff]  ;;  %v334_v9 = vld [vmem:[%s2345_s3 + $0x10] sm:$0xff]  ;;  %v333_v10 = vld [vmem:[%s2345_s3 + $0x8] sm:$0xff] }
  0x3f   :  { %264 = vmatpush.msrb.mxu0 %v105_v56  ;;  %283 = vmatpush.msrb.mxu1 %v122_v57  ;;  %v332_v11 = vld [vmem:[%s2345_s3] sm:$0xff]  ;;  %v1253_v12 = vld [vmem:[%s2347_s5 + $0x1f8] sm:$0xf]  ;;  %v1354_v13 = vld [vmem:[%s2347_s5 + $0x218] sm:$0xf0] }
  0x40   :  { %305 = vmatpush.msrb.mxu2 %v136_v58  ;;  %324 = vmatpush.msrb.mxu3 %v153_v59  ;;  %v1217_v14 = vld [vmem:[%s2347_s5 + $0x1b0] sm:$0xf]  ;;  %v1254_v15 = vor.u32 %v1354_v13, %v1253_v12  ;;  %v1345_v16 = vld [vmem:[%s2347_s5 + $0x1d0] sm:$0xf0]  ;;  %v1181_v17 = vld [vmem:[%s2347_s5 + $0x168] sm:$0xf] }
  0x41   :  { %265 = vmatpush.msrb.mxu0 %v104_v60  ;;  %284 = vmatpush.msrb.mxu1 %v121_v61  ;;  %v1350_v18 = vld [vmem:[%s2347_s5 + $0x1fc] sm:$0xf]  ;;  %v1218_v19 = vor.u32 %v1345_v16, %v1217_v14  ;;  %v1255_v20 = vld [vmem:[%s2347_s5 + $0x21c] sm:$0xf0]  ;;  %v1355_v22 = vld [vmem:[%s2347_s5 + $0x220] sm:$0xf0] }
  0x42   :  { %306 = vmatpush.msrb.mxu2 %v135_v62  ;;  %325 = vmatpush.msrb.mxu3 %v152_v63  ;;  %v1261_v21 = vld [vmem:[%s2347_s5 + $0x200] sm:$0xf]  ;;  %v1336_v23 = vld [vmem:[%s2347_s5 + $0x188] sm:$0xf0]  ;;  %v1258_v24 = vor.u32 %v1350_v18, %v1255_v20  ;;  %v1351_v26 = vld [vmem:[%s2347_s5 + $0x204] sm:$0xf] }
  0x43   :  { %307 = vmatmul.f32.vlgmr.msrb.gmra.mxu2 %v37_v0  ;;  %266 = vmatpush.msrb.mxu0 %v103_v1  ;;  %v1262_v25 = vor.u32 %v1355_v22, %v1261_v21  ;;  %v1263_v27 = vld [vmem:[%s2347_s5 + $0x224] sm:$0xf0]  ;;  %v1341_v29 = vld [vmem:[%s2347_s5 + $0x1b4] sm:$0xf]  ;;  %v1219_v30 = vld [vmem:[%s2347_s5 + $0x1d4] sm:$0xf0]  ;;  %v1182_v36 = vor.u32 %v1336_v23, %v1181_v17 }
  0x44   :  { %285 = vmatpush.msrb.mxu1 %v120_v2  ;;  %326 = vmatpush.msrb.mxu3 %v151_v3  ;;  %v1266_v28 = vor.u32 %v1351_v26, %v1263_v27  ;;  %v1361_v31 = vld [vmem:[%s2344_s2] ss:$0 sm:$0xff]  ;;  %v1222_v32 = vor.u32 %v1341_v29, %v1219_v30  ;;  %v1225_v33 = vld [vmem:[%s2347_s5 + $0x1b8] sm:$0xf]  ;;  %v1346_v34 = vld [vmem:[%s2347_s5 + $0x1d8] sm:$0xf0] }
  0x45   :  { %267 = vmatmul.f32.vlgmr.msrb.gmra.mxu0 %v35_v4  ;;  %327 = vmatmul.f32.vlgmr.msrb.gmra.mxu3 %v38_v5  ;;  %v1342_v35 = vld [vmem:[%s2347_s5 + $0x1bc] sm:$0xf]  ;;  %v1145_v37 = vld [vmem:[%s2347_s5 + $0x120] sm:$0xf]  ;;  %v1327_v38 = vld [vmem:[%s2347_s5 + $0x140] sm:$0xf0]  ;;  %v1226_v39 = vor.u32 %v1346_v34, %v1225_v33 }
  0x46   :  { %286 = vmatpush.msrb.mxu1 %v119_v6  ;;  %356 = vmatpush.msra.mxu0 %v335_v8  ;;  %v1227_v40 = vld [vmem:[%s2347_s5 + $0x1dc] sm:$0xf0]  ;;  %v1332_v42 = vld [vmem:[%s2347_s5 + $0x16c] sm:$0xf]  ;;  %v1183_v43 = vld [vmem:[%s2347_s5 + $0x18c] sm:$0xf0]  ;;  %v1146_v53 = vor.u32 %v1327_v38, %v1145_v37 }
  0x47   :  { %287 = vmatmul.f32.vlgmr.msrb.gmra.mxu1 %v36_v7  ;;  %849 = vmatpush.bf16.msra.mxu2 %v1258_v24  ;;  %v1230_v41 = vor.u32 %v1342_v35, %v1227_v40  ;;  %v1189_v44 = vld [vmem:[%s2347_s5 + $0x170] sm:$0xf]  ;;  %v1337_v45 = vld [vmem:[%s2347_s5 + $0x190] sm:$0xf0]  ;;  %v1191_v47 = vld [vmem:[%s2347_s5 + $0x194] sm:$0xf0]  ;;  %v1186_v49 = vor.u32 %v1332_v42, %v1183_v43 }
  0x48   :  { %357 = vmatpush.msra.mxu0 %v334_v9  ;;  %836 = vmatpush.bf16.msra.mxu1 %v1254_v15  ;;  %v1333_v46 = vld [vmem:[%s2347_s5 + $0x174] sm:$0xf]  ;;  %v1109_v48 = vld [vmem:[%s2347_s5 + $0xd8] sm:$0xf]  ;;  %v1190_v50 = vor.u32 %v1337_v45, %v1189_v44  ;;  %v1323_v51 = vld [vmem:[%s2347_s5 + $0x124] sm:$0xf] }
  0x49   :  { %862 = vmatpush.bf16.msra.mxu3 %v1262_v25  ;;  %v1194_v54 = vor.u32 %v1333_v46, %v1191_v47  ;;  %v1147_v55 = vld [vmem:[%s2347_s5 + $0x144] sm:$0xf0]  ;;  %v1328_v57 = vld [vmem:[%s2347_s5 + $0x148] sm:$0xf0]  ;;  %v1318_v59 = vld [vmem:[%s2347_s5 + $0xf8] sm:$0xf0] }
  0x4a   :  { %358 = vmatpush.msra.mxu0 %v333_v10  ;;  %v1153_v56 = vld [vmem:[%s2347_s5 + $0x128] sm:$0xf]  ;;  %v1324_v60 = vld [vmem:[%s2347_s5 + $0x12c] sm:$0xf]  ;;  %v1155_v61 = vld [vmem:[%s2347_s5 + $0x14c] sm:$0xf0]  ;;  %v1150_v0 = vor.u32 %v1323_v51, %v1147_v55  ;;  %v1110_v5 = vor.u32 %v1318_v59, %v1109_v48 }
  0x4b   :  { %850 = vmatpush.bf16.msra.mxu2 %v1222_v32  ;;  %v1073_v63 = vld [vmem:[%s2347_s5 + $0x90] sm:$0xf]  ;;  %v1154_v1 = vor.u32 %v1328_v57, %v1153_v56  ;;  %v1314_v2 = vld [vmem:[%s2347_s5 + $0xdc] sm:$0xf]  ;;  %v1158_v6 = vor.u32 %v1324_v60, %v1155_v61  ;;  %v1111_v7 = vld [vmem:[%s2347_s5 + $0xfc] sm:$0xf0] }
  0x4c   :  { %359 = vmatpush.msra.mxu0 %v332_v11  ;;  %837 = vmatpush.bf16.msra.mxu1 %v1218_v19  ;;  %v1117_v8 = vld [vmem:[%s2347_s5 + $0xe0] sm:$0xf]  ;;  %v1319_v9 = vld [vmem:[%s2347_s5 + $0x100] sm:$0xf0]  ;;  %v1309_v10 = vld [vmem:[%s2347_s5 + $0xb0] sm:$0xf0]  ;;  %v1114_v16 = vor.u32 %v1314_v2, %v1111_v7 }
  0x4d   :  { %863 = vmatpush.bf16.msra.mxu3 %v1226_v39  ;;  %v1315_v11 = vld [vmem:[%s2347_s5 + $0xe4] sm:$0xf]  ;;  %v1119_v12 = vld [vmem:[%s2347_s5 + $0x104] sm:$0xf0]  ;;  %v1118_v17 = vor.u32 %v1319_v9, %v1117_v8  ;;  %v1305_v18 = vld [vmem:[%s2347_s5 + $0x94] sm:$0xf]  ;;  %v1074_v20 = vor.u32 %v1309_v10, %v1073_v63 }
  0x4e   :  { %875 = vmatpush.bf16.msrb.mxu0 %v1266_v28  ;;  %v1037_v15 = vld [vmem:[%s2347_s5 + $0x48] sm:$0xf]  ;;  %v1122_v21 = vor.u32 %v1315_v11, %v1119_v12  ;;  %v1075_v22 = vld [vmem:[%s2347_s5 + $0xb4] sm:$0xf0]  ;;  %v1310_v24 = vld [vmem:[%s2347_s5 + $0xb8] sm:$0xf0] }
  0x4f   :  { %851 = vmatpush.bf16.msra.mxu2 %v1186_v49  ;;  %v1081_v23 = vld [vmem:[%s2347_s5 + $0x98] sm:$0xf]  ;;  %v1300_v25 = vld [vmem:[%s2347_s5 + $0x68] sm:$0xf0]  ;;  %v1306_v26 = vld [vmem:[%s2347_s5 + $0x9c] sm:$0xf] }
  0x50   :  { %838 = vmatpush.bf16.msra.mxu1 %v1182_v36  ;;  %v1083_v27 = vld [vmem:[%s2347_s5 + $0xbc] sm:$0xf0]  ;;  %v1082_v32 = vor.u32 %v1310_v24, %v1081_v23  ;;  %v1296_v33 = vld [vmem:[%s2347_s5 + $0x4c] sm:$0xf]  ;;  %v1038_v35 = vor.u32 %v1300_v25, %v1037_v15  ;;  %v1039_v37 = vld [vmem:[%s2347_s5 + $0x6c] sm:$0xf0] }
  0x51   :  { %864 = vmatpush.bf16.msra.mxu3 %v1190_v50  ;;  %v1001_v30 = vld [vmem:[%s2347_s5] sm:$0xf]  ;;  %v1086_v36 = vor.u32 %v1306_v26, %v1083_v27  ;;  %v1045_v38 = vld [vmem:[%s2347_s5 + $0x50] sm:$0xf]  ;;  %v1301_v39 = vld [vmem:[%s2347_s5 + $0x70] sm:$0xf0]  ;;  %v1042_v48 = vor.u32 %v1296_v33, %v1039_v37 }
  0x52   :  { %876 = vmatpush.bf16.msrb.mxu0 %v1230_v41  ;;  %v1291_v41 = vld [vmem:[%s2347_s5 + $0x20] sm:$0xf0]  ;;  %v1297_v42 = vld [vmem:[%s2347_s5 + $0x54] sm:$0xf]  ;;  %v1047_v43 = vld [vmem:[%s2347_s5 + $0x74] sm:$0xf0]  ;;  %v1046_v49 = vor.u32 %v1301_v39, %v1045_v38 }
  0x53   :  { %852 = vmatpush.bf16.msra.mxu2 %v1150_v0  ;;  %v1269_v45 = vld [vmem:[%s2347_s5 + $0x208] sm:$0xf]  ;;  %v1356_v46 = vld [vmem:[%s2347_s5 + $0x228] sm:$0xf0]  ;;  %v1287_v50 = vld [vmem:[%s2347_s5 + $0x4] sm:$0xf]  ;;  %v1050_v55 = vor.u32 %v1297_v42, %v1047_v43 }
  0x54   :  { %839 = vmatpush.bf16.msra.mxu1 %v1146_v53  ;;  %v1003_v51 = vld [vmem:[%s2347_s5 + $0x24] sm:$0xf0]  ;;  %v1002_v53 = vor.u32 %v1291_v41, %v1001_v30  ;;  %v1292_v57 = vld [vmem:[%s2347_s5 + $0x28] sm:$0xf0]  ;;  %v1270_v60 = vor.u32 %v1356_v46, %v1269_v45  ;;  %v1011_v61 = vld [vmem:[%s2347_s5 + $0x2c] sm:$0xf0] }
  0x55   :  { %865 = vmatpush.bf16.msra.mxu3 %v1154_v1  ;;  %v1009_v56 = vld [vmem:[%s2347_s5 + $0x8] sm:$0xf]  ;;  %v1271_v63 = vld [vmem:[%s2347_s5 + $0x22c] sm:$0xf0]  ;;  %v1347_v0 = vld [vmem:[%s2347_s5 + $0x1e0] sm:$0xf0] }
  0x56   :  { %877 = vmatpush.bf16.msrb.mxu0 %v1194_v54  ;;  %v1233_v54 = vld [vmem:[%s2347_s5 + $0x1c0] sm:$0xf]  ;;  %v1277_v1 = vld [vmem:[%s2347_s5 + $0x210] sm:$0xf]  ;;  %v1357_v2 = vld [vmem:[%s2347_s5 + $0x230] sm:$0xf0] }
  0x57   :  { %853 = vmatpush.bf16.msra.mxu2 %v1114_v16  ;;  %v1279_v7 = vld [vmem:[%s2347_s5 + $0x234] sm:$0xf0]  ;;  %v1234_v10 = vor.u32 %v1347_v0, %v1233_v54  ;;  %v1278_v12 = vor.u32 %v1357_v2, %v1277_v1  ;;  %v1338_v15 = vld [vmem:[%s2347_s5 + $0x198] sm:$0xf0]  ;;  %v1161_v23 = vld [vmem:[%s2347_s5 + $0x130] sm:$0xf] }
  0x58   :  { %840 = vmatpush.bf16.msra.mxu1 %v1110_v5  ;;  %v1010_v5 = vor.u32 %v1292_v57, %v1009_v56  ;;  %v1197_v11 = vld [vmem:[%s2347_s5 + $0x178] sm:$0xf]  ;;  %v1334_v25 = vld [vmem:[%s2347_s5 + $0x17c] sm:$0xf]  ;;  %v1199_v26 = vld [vmem:[%s2347_s5 + $0x19c] sm:$0xf0] }
  0x59   :  { %866 = vmatpush.bf16.msra.mxu3 %v1118_v17  ;;  %v1241_v17 = vld [vmem:[%s2347_s5 + $0x1c8] sm:$0xf]  ;;  %v1329_v27 = vld [vmem:[%s2347_s5 + $0x150] sm:$0xf0]  ;;  %v1339_v30 = vld [vmem:[%s2347_s5 + $0x1a0] sm:$0xf0]  ;;  %v1202_v33 = vor.u32 %v1334_v25, %v1199_v26 }
  0x5a   :  { %878 = vmatpush.bf16.msrb.mxu0 %v1158_v6  ;;  %v1353_v6 = vld [vmem:[%s2347_s5 + $0x214] sm:$0xf]  ;;  %v1320_v37 = vld [vmem:[%s2347_s5 + $0x108] sm:$0xf0]  ;;  %v1311_v41 = vld [vmem:[%s2347_s5 + $0xc0] sm:$0xf0] }
  0x5b   :  { %v1282_v16 = vor.u32 %v1353_v6, %v1279_v7  ;;  %v1053_v43 = vld [vmem:[%s2347_s5 + $0x58] sm:$0xf]  ;;  %v1325_v46 = vld [vmem:[%s2347_s5 + $0x134] sm:$0xf]  ;;  %v1312_v7 = vld [vmem:[%s2347_s5 + $0xc8] sm:$0xf0] }
  0x5c   :  { %841 = vmatpush.bf16.msra.mxu1 %v1074_v20  ;;  %v1243_v20 = vld [vmem:[%s2347_s5 + $0x1ec] sm:$0xf0]  ;;  %v1293_v56 = vld [vmem:[%s2347_s5 + $0x30] sm:$0xf0]  ;;  %v1135_v0 = vld [vmem:[%s2347_s5 + $0x114] sm:$0xf0] }
  0x5d   :  { %867 = vmatpush.bf16.msra.mxu3 %v1082_v32  ;;  %v1207_v32 = vld [vmem:[%s2347_s5 + $0x1a4] sm:$0xf0]  ;;  %v1294_v25 = vld [vmem:[%s2347_s5 + $0x38] sm:$0xf0] }
  0x5e   :  { %879 = vmatpush.bf16.msrb.mxu0 %v1122_v21  ;;  %v1290_v26 = vld [vmem:[%s2347_s5 + $0x1c] sm:$0xf] }
  0x60   :  { %842 = vmatpush.bf16.msra.mxu1 %v1038_v35 }
  0x61   :  { %868 = vmatpush.bf16.msra.mxu3 %v1046_v49 }
  0x62   :  { %880 = vmatpush.bf16.msrb.mxu0 %v1086_v36  ;;  %v1125_v36 = vld [vmem:[%s2347_s5 + $0xe8] sm:$0xf] }
  0x63   :  { %v1126_v39 = vor.u32 %v1320_v37, %v1125_v36  ;;  %v1249_v37 = vld [vmem:[%s2347_s5 + $0x1d0] sm:$0xf] }
  0x64   :  { %843 = vmatpush.bf16.msra.mxu1 %v1002_v53 }
  0x65   :  { %869 = vmatpush.bf16.msra.mxu3 %v1010_v5  ;;  %v1097_v5 = vld [vmem:[%s2347_s5 + $0xa8] sm:$0xf] }
  0x66   :  { %881 = vmatpush.bf16.msrb.mxu0 %v1050_v55  ;;  %v1017_v55 = vld [vmem:[%s2347_s5 + $0x10] sm:$0xf] }
  0x67   :  { %v1018_v57 = vor.u32 %v1293_v56, %v1017_v55  ;;  %v1033_v55 = vld [vmem:[%s2347_s5 + $0x20] sm:$0xf]  ;;  %v1295_v56 = vld [vmem:[%s2347_s5 + $0x40] sm:$0xf0] }
  0x68   :  { %888 = vmatpush.bf16.msrb.mxu1 %v1270_v60  ;;  %v1133_v60 = vld [vmem:[%s2347_s5 + $0xf0] sm:$0xf] }
  0x69   :  { %914 = vmatpush.bf16.msrb.mxu3 %v1278_v12  ;;  %v1298_v12 = vld [vmem:[%s2347_s5 + $0x5c] sm:$0xf] }
  0x6c   :  { %889 = vmatpush.bf16.msrb.mxu1 %v1234_v10  ;;  %v1098_v10 = vor.u32 %v1312_v7, %v1097_v5 }
  0xb8   :  { %v188_v52 = vpop.f32.mrf.mxu0 }
  0xb9   :  { %v189_v58 = vadd.f32 %v1361_v31, %v188_v52  ;;  %v1078_v31 = vor.u32 %v1305_v18, %v1075_v22  ;;  %v1348_v18 = vld [vmem:[%s2347_s5 + $0x1e8] sm:$0xf0]  ;;  %v1198_v22 = vor.u32 %v1338_v15, %v1197_v11 }
  0xba   :  { %v1242_v24 = vor.u32 %v1348_v18, %v1241_v17  ;;  %v1299_v17 = vld [vmem:[%s2347_s5 + $0x64] sm:$0xf]  ;;  %v1063_v18 = vld [vmem:[%s2347_s5 + $0x84] sm:$0xf0] }
  0xbb   :  { %v208_v62 = vpop.f32.mrf.mxu1  ;;  %854 = vmatpush.bf16.msra.mxu2 %v1078_v31  ;;  %v1335_v31 = vld [vmem:[%s2347_s5 + $0x184] sm:$0xf]  ;;  %890 = vmatpush.bf16.msrb.mxu1 %v1198_v22  ;;  %v1019_v22 = vld [vmem:[%s2347_s5 + $0x34] sm:$0xf0] }
  0xbc   :  { %v209_v3 = vadd.f32 %v208_v62, %v189_v58  ;;  %v228_v4 = vpop.f32.mrf.mxu2  ;;  %v1288_v58 = vld [vmem:[%s2347_s5 + $0xc] sm:$0xf]  ;;  %915 = vmatpush.bf16.msrb.mxu3 %v1242_v24  ;;  %v1210_v38 = vor.u32 %v1335_v31, %v1207_v32  ;;  %v1285_v32 = vld [vmem:[%s2347_s5 + $0x218] sm:$0xf] }
  0xbd   :  { %v1352_v62 = vld [vmem:[%s2347_s5 + $0x20c] sm:$0xf]  ;;  %v1014_v8 = vor.u32 %v1288_v58, %v1011_v61 }
  0xbe   :  { %v229_v13 = vadd.f32 %v228_v4, %v209_v3  ;;  %v1006_v4 = vor.u32 %v1287_v50, %v1003_v51  ;;  %v1274_v9 = vor.u32 %v1352_v62, %v1271_v63  ;;  %v1330_v50 = vld [vmem:[%s2347_s5 + $0x158] sm:$0xf0]  ;;  %v1316_v58 = vld [vmem:[%s2347_s5 + $0xec] sm:$0xf]  ;;  %v1321_v62 = vld [vmem:[%s2347_s5 + $0x110] sm:$0xf0] }
  0xbf   :  { %v248_v14 = vpop.f32.mrf.mxu3  ;;  %855 = vmatpush.bf16.msra.mxu2 %v1042_v48  ;;  %882 = vmatpush.bf16.msrb.mxu0 %v1014_v8  ;;  %v1169_v48 = vld [vmem:[%s2347_s5 + $0x138] sm:$0xf]  ;;  %v1326_v51 = vld [vmem:[%s2347_s5 + $0x13c] sm:$0xf]  ;;  %v1317_v63 = vld [vmem:[%s2347_s5 + $0xf4] sm:$0xf]  ;;  %v1134_v1 = vor.u32 %v1321_v62, %v1133_v60 }
  0xc0   :  { %v249_v19 = vadd.f32 %v248_v14, %v229_v13  ;;  %v1343_v13 = vld [vmem:[%s2347_s5 + $0x1c4] sm:$0xf]  ;;  %v1235_v14 = vld [vmem:[%s2347_s5 + $0x1e4] sm:$0xf0]  ;;  %v1170_v53 = vor.u32 %v1330_v50, %v1169_v48  ;;  %v1138_v2 = vor.u32 %v1317_v63, %v1135_v0  ;;  %v1308_v8 = vld [vmem:[%s2347_s5 + $0xac] sm:$0xf] }
  0xc1   :  { %v1238_v21 = vor.u32 %v1343_v13, %v1235_v14  ;;  %v1055_v13 = vld [vmem:[%s2347_s5 + $0x7c] sm:$0xf0]  ;;  %v1313_v50 = vld [vmem:[%s2347_s5 + $0xd0] sm:$0xf0] }
  0xc2   :  { %v268_v28 = vpop.f32.mrf.mxu0  ;;  %v1061_v14 = vld [vmem:[%s2347_s5 + $0x60] sm:$0xf]  ;;  %v1058_v15 = vor.u32 %v1298_v12, %v1055_v13 }
  0xc3   :  { %v269_v29 = vadd.f32 %v268_v28, %v249_v19  ;;  %856 = vmatpush.bf16.msra.mxu2 %v1006_v4  ;;  %v1344_v19 = vld [vmem:[%s2347_s5 + $0x1cc] sm:$0xf]  ;;  %v1091_v4 = vld [vmem:[%s2347_s5 + $0xc4] sm:$0xf0] }
  0xc4   :  { %v288_v34 = vpop.f32.mrf.mxu1  ;;  %v1246_v28 = vor.u32 %v1344_v19, %v1243_v20  ;;  %v1066_v20 = vor.u32 %v1299_v17, %v1063_v18 }
  0xc5   :  { %v289_v40 = vadd.f32 %v288_v34, %v269_v29  ;;  %v1205_v29 = vld [vmem:[%s2347_s5 + $0x180] sm:$0xf]  ;;  %v1162_v34 = vor.u32 %v1329_v27, %v1161_v23  ;;  %v1025_v23 = vld [vmem:[%s2347_s5 + $0x18] sm:$0xf] }
  0xc6   :  { %v308_v44 = vpop.f32.mrf.mxu2  ;;  %v1206_v35 = vor.u32 %v1339_v30, %v1205_v29  ;;  %v1027_v27 = vld [vmem:[%s2347_s5 + $0x3c] sm:$0xf0] }
  0xc7   :  { %v309_v47 = vadd.f32 %v308_v44, %v289_v40  ;;  %901 = vmatpush.bf16.msrb.mxu2 %v1274_v9  ;;  %891 = vmatpush.bf16.msrb.mxu1 %v1162_v34  ;;  %v1089_v40 = vld [vmem:[%s2347_s5 + $0xa0] sm:$0xf]  ;;  %v1302_v44 = vld [vmem:[%s2347_s5 + $0x78] sm:$0xf0]  ;;  %v1099_v9 = vld [vmem:[%s2347_s5 + $0xcc] sm:$0xf0]  ;;  %v1030_v29 = vor.u32 %v1290_v26, %v1027_v27 }
  0xc8   :  { %v328_v52 = vpop.f32.mrf.mxu3  ;;  %916 = vmatpush.bf16.msrb.mxu3 %v1206_v35  ;;  %v1090_v42 = vor.u32 %v1311_v41, %v1089_v40  ;;  %v1054_v45 = vor.u32 %v1302_v44, %v1053_v43  ;;  %v1102_v11 = vor.u32 %v1308_v8, %v1099_v9  ;;  %v1362_v30 = vld [vmem:[%s2346_s4] ss:$0 sm:$0xff]  ;;  %v1213_v40 = vld [vmem:[%s2347_s5 + $0x188] sm:$0xf]  ;;  %v1340_v41 = vld [vmem:[%s2347_s5 + $0x1a8] sm:$0xf0] }
  0xc9   :  { %v329_v59 = vadd.f32 %v328_v52, %v309_v47  ;;  %v1163_v47 = vld [vmem:[%s2347_s5 + $0x154] sm:$0xf0]  ;;  %v1171_v52 = vld [vmem:[%s2347_s5 + $0x15c] sm:$0xf0]  ;;  %v1331_v44 = vld [vmem:[%s2347_s5 + $0x160] sm:$0xf0] }
  0xca   :  { %v1166_v49 = vor.u32 %v1325_v46, %v1163_v47  ;;  %v1174_v54 = vor.u32 %v1326_v51, %v1171_v52  ;;  %v1177_v43 = vld [vmem:[%s2347_s5 + $0x140] sm:$0xf]  ;;  %v1141_v46 = vld [vmem:[%s2347_s5 + $0xf8] sm:$0xf]  ;;  %v1322_v47 = vld [vmem:[%s2347_s5 + $0x118] sm:$0xf0] }
  0xcb   :  { %v331_v3 = vmax.f32 %v329_v59, 0.0  ;;  %902 = vmatpush.bf16.msrb.mxu2 %v1238_v21  ;;  %892 = vmatpush.bf16.msrb.mxu1 %v1126_v39  ;;  %v1127_v59 = vld [vmem:[%s2347_s5 + $0x10c] sm:$0xf0]  ;;  %v1289_v21 = vld [vmem:[%s2347_s5 + $0x14] sm:$0xf]  ;;  %v1142_v48 = vor.u32 %v1322_v47, %v1141_v46 }
  0xcc   :  { %917 = vmatpush.bf16.msrb.mxu3 %v1170_v53  ;;  %v1130_v61 = vor.u32 %v1316_v58, %v1127_v59  ;;  %v1022_v24 = vor.u32 %v1289_v21, %v1019_v22  ;;  %v1069_v52 = vld [vmem:[%s2347_s5 + $0x68] sm:$0xf]  ;;  %v1304_v53 = vld [vmem:[%s2347_s5 + $0x88] sm:$0xf0]  ;;  %v446_v58 = vld [vmem:[%s2348_s6] sm:$0xff] }
  0xcd   :  { %998 = vmatmul.msk.f32.vlgmr.msra.gmra.mxu0 %vm340_vm0, %v331_v3  ;;  %v1307_v3 = vld [vmem:[%s2347_s5 + $0xa4] sm:$0xf]  ;;  %v450_v59 = vperm.slane %v446_v58, 0  ;;  %v453_v60 = vperm.slane %v446_v58, 3  ;;  %v454_v9 = vperm.slane %v446_v58, 4  ;;  %v455_v17 = vperm.slane %v446_v58, 5 }
  0xce   :  { %927 = vmatpush.bf16.msra.mxu0 %v1282_v16  ;;  %v1094_v6 = vor.u32 %v1307_v3, %v1091_v4  ;;  %v1303_v16 = vld [vmem:[%s2347_s5 + $0x80] sm:$0xf0]  ;;  %v456_v18 = vperm.slane %v446_v58, 6  ;;  %v1363_v26 = vld [vmem:[%s2348_s6 + $0x8] ss:$0 sm:$0xff] }
  0xcf   :  { %903 = vmatpush.bf16.msrb.mxu2 %v1202_v33  ;;  %893 = vmatpush.bf16.msrb.mxu1 %v1090_v42  ;;  %v1062_v19 = vor.u32 %v1303_v16, %v1061_v14  ;;  %v1358_v33 = vld [vmem:[%s2347_s5 + $0x238] sm:$0xf0]  ;;  %v1214_v42 = vor.u32 %v1340_v41, %v1213_v40 }
  0xd0   :  { %918 = vmatpush.bf16.msrb.mxu3 %v1134_v1  ;;  %v1286_v36 = vor.u32 %v1358_v33, %v1285_v32  ;;  %v451_v1 = vperm.slane %v446_v58, 1 }
  0xd2   :  { %928 = vmatpush.bf16.msra.mxu0 %v1246_v28  ;;  %v1026_v28 = vor.u32 %v1294_v25, %v1025_v23 }
  0xd3   :  { %894 = vmatpush.bf16.msrb.mxu1 %v1054_v45  ;;  %904 = vmatpush.bf16.msrb.mxu2 %v1166_v49  ;;  %v1178_v45 = vor.u32 %v1331_v44, %v1177_v43  ;;  %v1105_v49 = vld [vmem:[%s2347_s5 + $0xb0] sm:$0xf] }
  0xd4   :  { %919 = vmatpush.bf16.msrb.mxu3 %v1098_v10  ;;  %v1106_v51 = vor.u32 %v1313_v50, %v1105_v49 }
  0xd6   :  { %929 = vmatpush.bf16.msra.mxu0 %v1210_v38  ;;  %v1349_v38 = vld [vmem:[%s2347_s5 + $0x1f0] sm:$0xf0]  ;;  %s1417_s5 = smov [#allocation4]  }
  0xd7   :  { %895 = vmatpush.bf16.msrb.mxu1 %v1018_v57  ;;  %905 = vmatpush.bf16.msrb.mxu2 %v1130_v61  ;;  %v1250_v39 = vor.u32 %v1349_v38, %v1249_v37  ;;  %v1034_v57 = vor.u32 %v1295_v56, %v1033_v55  ;;  %s978_s7 = sshll.u32 %s1417_s5, 4  ;;  %s979_s7 = int_to_ptr.vmem [resolvable:$true] %s978_s7 }
  0xd8   :  { %920 = vmatpush.bf16.msrb.mxu3 %v1062_v19 }
  0xda   :  { %930 = vmatpush.bf16.msra.mxu0 %v1174_v54  ;;  %v1070_v54 = vor.u32 %v1304_v53, %v1069_v52 }
  0xdb   :  { %906 = vmatpush.bf16.msrb.mxu2 %v1094_v6 }
  0xdc   :  { %921 = vmatpush.bf16.msrb.mxu3 %v1026_v28 }
  0xde   :  { %931 = vmatpush.bf16.msra.mxu0 %v1138_v2  ;;  %v452_v2 = vperm.slane %v446_v58, 2 }
  0xdf   :  { %907 = vmatpush.bf16.msrb.mxu2 %v1058_v15 }
  0xe2   :  { %932 = vmatpush.bf16.msra.mxu0 %v1102_v11  ;;  %v457_v11 = vperm.slane %v446_v58, 7 }
  0xe3   :  { %908 = vmatpush.bf16.msrb.mxu2 %v1022_v24 }
  0xe6   :  { %933 = vmatpush.bf16.msra.mxu0 %v1066_v20 }
  0xea   :  { %934 = vmatpush.bf16.msra.mxu0 %v1030_v29 }
 0x14a   :  { %v361_v31 = vpop.f32.mrf.mxu0 }
 0x14b   :  { %v362_v34 = vadd.f32 %v1362_v30, %v361_v31 }
 0x14d   :  { %v365_v35 = vpack.c.bf16 %v362_v34, %v362_v34  ;;  %364 = vst [vmem:[#allocation2] sm:$0xff] %v362_v34 }
 0x14e   :  { %972 = dma.vmem_to_hbm [thread:$0]  %s968_s30, 128, %s970_s11, [#allocation3]  }
 0x14f   :  { %844 = vmatmul.bf16.vlgmr.msra.gmra.mxu1 %v365_v35  ;;  %857 = vmatmul.bf16.vlgmr.msra.gmra.mxu2 %v365_v35 }
 0x150   :  { %870 = vmatmul.bf16.vlgmr.msra.gmra.mxu3 %v365_v35  ;;  %883 = vmatmul.bf16.vlgmr.msrb.gmra.mxu0 %v365_v35 }
 0x151   :  { %940 = vmatpush.bf16.msra.mxu1 %v1286_v36 }
 0x155   :  { %941 = vmatpush.bf16.msra.mxu1 %v1250_v39 }
 0x159   :  { %942 = vmatpush.bf16.msra.mxu1 %v1214_v42 }
 0x15d   :  { %943 = vmatpush.bf16.msra.mxu1 %v1178_v45 }
 0x15f   :  { %896 = vmatmul.bf16.vlgmr.msrb.gmra.mxu1 %v365_v35  ;;  %909 = vmatmul.bf16.vlgmr.msrb.gmra.mxu2 %v365_v35 }
 0x160   :  { %922 = vmatmul.bf16.vlgmr.msrb.gmra.mxu3 %v365_v35  ;;  %935 = vmatmul.bf16.vlgmr.msra.gmra.mxu0 %v365_v35 }
 0x161   :  { %944 = vmatpush.bf16.msra.mxu1 %v1142_v48 }
 0x165   :  { %945 = vmatpush.bf16.msra.mxu1 %v1106_v51 }
 0x169   :  { %946 = vmatpush.bf16.msra.mxu1 %v1070_v54 }
 0x16d   :  { %947 = vmatpush.bf16.msra.mxu1 %v1034_v57 }
 0x170   :  { %948 = vmatmul.bf16.vlgmr.msra.gmra.mxu1 %v365_v35 }
 0x1cc   :  { %v845_v61 = vpop.f32.mrf.mxu1 }
 0x1cd   :  { %v846_v62 = vadd.f32 %v845_v61, %v450_v59  ;;  %v884_v63 = vpop.f32.mrf.mxu0 }
 0x1ce   :  { %v885_v0 = vadd.f32 %v884_v63, %v453_v60 }
 0x1cf   :  { %953 = vst [vmem:[#allocation4] sm:$0xff] %v846_v62 }
 0x1d0   :  { %956 = vst [vmem:[#allocation4 + $0x18] sm:$0xff] %v885_v0 }
 0x1d2   :  { %v858_v3 = vpop.f32.mrf.mxu2 }
 0x1d3   :  { %v859_v4 = vadd.f32 %v858_v3, %v451_v1  ;;  %v871_v5 = vpop.f32.mrf.mxu3 }
 0x1d4   :  { %v872_v6 = vadd.f32 %v871_v5, %v452_v2  ;;  %v847_v7 = vpop.f32.mrf.mxu1 }
 0x1d5   :  { %954 = vst [vmem:[#allocation4 + $0x8] sm:$0xff] %v859_v4  ;;  %v886_v8 = vpop.f32.mrf.mxu0 }
 0x1d6   :  { %955 = vst [vmem:[#allocation4 + $0x10] sm:$0xff] %v872_v6 }
 0x1da   :  { %v860_v10 = vpop.f32.mrf.mxu2 }
 0x1db   :  { %v873_v12 = vpop.f32.mrf.mxu3 }
 0x1dc   :  { %v897_v13 = vpop.f32.mrf.mxu1 }
 0x1dd   :  { %v898_v14 = vadd.f32 %v897_v13, %v454_v9  ;;  %v936_v15 = vpop.f32.mrf.mxu0 }
 0x1de   :  { %v937_v16 = vadd.f32 %v936_v15, %v457_v11 }
 0x1df   :  { %957 = vst [vmem:[#allocation4 + $0x20] sm:$0xff] %v898_v14 }
 0x1e0   :  { %960 = vst [vmem:[#allocation4 + $0x38] sm:$0xff] %v937_v16 }
 0x1e2   :  { %v910_v19 = vpop.f32.mrf.mxu2 }
 0x1e3   :  { %v911_v20 = vadd.f32 %v910_v19, %v455_v17  ;;  %v923_v21 = vpop.f32.mrf.mxu3 }
 0x1e4   :  { %v924_v22 = vadd.f32 %v923_v21, %v456_v18  ;;  %v899_v23 = vpop.f32.mrf.mxu1 }
 0x1e5   :  { %958 = vst [vmem:[#allocation4 + $0x28] sm:$0xff] %v911_v20  ;;  %v938_v24 = vpop.f32.mrf.mxu0 }
 0x1e6   :  { %959 = vst [vmem:[#allocation4 + $0x30] sm:$0xff] %v924_v22 }
 0x1e7   :  { %983 = dma.vmem_to_hbm [thread:$0]  %s979_s7, 1024, %s981_s14, [#allocation5]  }
 0x1ea   :  { %v912_v25 = vpop.f32.mrf.mxu2 }
 0x1eb   :  { %v925_v27 = vpop.f32.mrf.mxu3 }
 0x1ed   :  { %v949_v28 = vpop.f32.mrf.mxu1 }
 0x1ee   :  { %v950_v29 = vadd.f32 %v1363_v26, %v949_v28 }
 0x1f0   :  { %961 = vst [vmem:[%s2351_s9] sm:$0xff] %v950_v29 }
 0x1f5   :  { %v951_v30 = vpop.f32.mrf.mxu1 }
 0x1f6   :  { %1412 = dma.done.wait [#allocation3], 128  }
 0x1f7   :  { %1413 = vsyncadd [#allocation3], 4294967168 }
 0x1f8   :  { %1414 = dma.done.wait [#allocation5], 1024  }
 0x1f9   :  { %1415 = vsyncadd [#allocation5], 4294966272 }
 0x1fa   :  { %996 = vsyncpa [#allocation3], 1 }
 0x1fb   :  { %997 = vsyncpa [#allocation5], 1 }

</bundles_post_ra>
